<compile_context>
chip_gen: v6e
topology: v6e:2x2x1
jax: 0.10.0
libtpu: 0.0.40
codegen_flags: <defaults>
</compile_context>

<pallas_src>
import functools
import math

import jax
import jax.numpy as jnp
from jax.experimental import pallas as pl
from jax.experimental.pallas import tpu as pltpu


def _round_up(x, m):
    return ((x + m - 1) // m) * m


# ---------------------------------------------------------------------------
# Fused path: out = tanh(A @ (X @ W) + b) in a single kernel, grid over
# batch blocks.  X arrives pre-flattened (batch folded into rows).
# ---------------------------------------------------------------------------
def _fused_kernel(x_ref, a_ref, w_ref, b_ref, o_ref, *, bb, n_p):
    # x_ref: (bb*n_p, F_in_p)    a_ref: (bb, n_p, n_p)
    # w_ref: (F_in_p, F_out_p)   b_ref: (1, F_out_p) f32
    # o_ref: (bb, n_p, F_out_p)
    # One tall MXU matmul for the whole batch block (f32 accumulation).
    h = jnp.dot(x_ref[...], w_ref[...], preferred_element_type=jnp.float32)
    h = h.astype(a_ref.dtype)          # bf16 path: feed MXU in compute dtype
    bias = b_ref[...]                  # (1, F_out_p) f32
    for i in range(bb):                # static unroll; bb is small (<= 16)
        h_i = h[i * n_p:(i + 1) * n_p, :]        # sublane-aligned static slice
        out_i = jnp.dot(a_ref[i], h_i, preferred_element_type=jnp.float32)
        # Bias-add + tanh in f32 (VPU/EUP), cast, lane-dense store.
        o_ref[i] = jnp.tanh(out_i + bias).astype(o_ref.dtype)


def _fused_forward(x_p, a_p, w_p, b_p, out_dtype, bb):
    b_pad, n_p, f_in_p = x_p.shape
    f_out_p = w_p.shape[1]
    x_flat = x_p.reshape(b_pad * n_p, f_in_p)
    kernel = functools.partial(_fused_kernel, bb=bb, n_p=n_p)
    return pl.pallas_call(
        kernel,
        out_shape=jax.ShapeDtypeStruct((b_pad, n_p, f_out_p), out_dtype),
        grid_spec=pltpu.PrefetchScalarGridSpec(
            num_scalar_prefetch=0,
            grid=(b_pad // bb,),
            in_specs=[
                pl.BlockSpec((bb * n_p, f_in_p), lambda g: (g, 0)),
                pl.BlockSpec((bb, n_p, n_p), lambda g: (g, 0, 0)),
                # W and bias are grid-invariant (same block every step).
                pl.BlockSpec((f_in_p, f_out_p), lambda g: (0, 0)),
                pl.BlockSpec((1, f_out_p), lambda g: (0, 0)),
            ],
            out_specs=pl.BlockSpec((bb, n_p, f_out_p), lambda g: (g, 0, 0)),
        ),
        compiler_params=pltpu.CompilerParams(
            dimension_semantics=("parallel",)),
    )(x_flat, a_p, w_p, b_p)


_FUSED_VMEM_BUDGET = 12 * 1024 * 1024   # stays inside default scoped VMEM on all chips


def _pick_fused_batch_block(batch, n_p, f_in_p, f_out_p, in_bytes, out_bytes):
    """Largest batch block whose fused working set fits VMEM (0 => tiled path)."""
    def footprint(bb):
        tiles = (bb * n_p * f_in_p * in_bytes        # X tile
                 + bb * n_p * n_p * in_bytes         # A tile
                 + bb * n_p * f_out_p * out_bytes    # out tile
                 + f_in_p * f_out_p * in_bytes       # W (grid-invariant)
                 + f_out_p * 4)                      # bias
        internal = (bb * n_p * f_out_p + n_p * f_out_p) * 4   # f32 temporaries
        return 2 * tiles + internal                  # double-buffered pipeline slots
    bb = min(batch, max(1, 256 // n_p), 16)          # fold ~256 rows into X@W
    while bb > 1 and footprint(bb) > _FUSED_VMEM_BUDGET:
        bb -= 1
    return bb if footprint(bb) <= _FUSED_VMEM_BUDGET else 0


# ---------------------------------------------------------------------------
# Tiled fallback, stage 1:  H = X @ W  (batch folded into the row axis)
# ---------------------------------------------------------------------------
def _xw_kernel(x_ref, w_ref, h_ref):
    # x_ref: (TM, F_in_p)   w_ref: (F_in_p, F_out_p)   h_ref: (TM, F_out_p)
    h_ref[...] = jnp.dot(
        x_ref[...], w_ref[...], preferred_element_type=jnp.float32
    ).astype(h_ref.dtype)


def _xw_matmul(x_flat, w, h_dtype, tm):
    m_pad, f_in_p = x_flat.shape
    f_out_p = w.shape[1]
    return pl.pallas_call(
        _xw_kernel,
        out_shape=jax.ShapeDtypeStruct((m_pad, f_out_p), h_dtype),
        grid_spec=pltpu.PrefetchScalarGridSpec(
            num_scalar_prefetch=0,
            grid=(m_pad // tm,),
            in_specs=[
                pl.BlockSpec((tm, f_in_p), lambda m: (m, 0)),
                pl.BlockSpec((f_in_p, f_out_p), lambda m: (0, 0)),
            ],
            out_specs=pl.BlockSpec((tm, f_out_p), lambda m: (m, 0)),
        ),
        compiler_params=pltpu.CompilerParams(
            dimension_semantics=("parallel",)),
    )(x_flat, w)


# ---------------------------------------------------------------------------
# Tiled fallback, stage 2: out = tanh(A @ H + b), f32 accumulator over K tiles
# ---------------------------------------------------------------------------
def _ah_kernel(a_ref, h_ref, b_ref, o_ref, acc_ref):
    # a_ref: (TM, TK)   h_ref: (TK, F_out_p)   b_ref: (1, F_out_p)
    # o_ref: (TM, F_out_p)   acc_ref: (TM, F_out_p) f32
    k = pl.program_id(2)

    @pl.when(k == 0)
    def _():
        acc_ref[...] = jnp.zeros_like(acc_ref)

    acc_ref[...] += jnp.dot(
        a_ref[...], h_ref[...], preferred_element_type=jnp.float32)

    @pl.when(k == pl.num_programs(2) - 1)
    def _():
        o_ref[...] = jnp.tanh(acc_ref[...] + b_ref[...]).astype(o_ref.dtype)


def _ah_matmul(a, h, bias2d, out_dtype, tm, tk):
    b_dim, n_pad, _ = a.shape
    f_out_p = h.shape[-1]
    return pl.pallas_call(
        _ah_kernel,
        out_shape=jax.ShapeDtypeStruct((b_dim, n_pad, f_out_p), out_dtype),
        grid_spec=pltpu.PrefetchScalarGridSpec(
            num_scalar_prefetch=0,
            grid=(b_dim, n_pad // tm, n_pad // tk),
            in_specs=[
                pl.BlockSpec((None, tm, tk), lambda b, m, k: (b, m, k)),
                pl.BlockSpec((None, tk, f_out_p), lambda b, m, k: (b, k, 0)),
                pl.BlockSpec((1, f_out_p), lambda b, m, k: (0, 0)),
            ],
            out_specs=pl.BlockSpec(
                (None, tm, f_out_p), lambda b, m, k: (b, m, 0)),
            scratch_shapes=[pltpu.VMEM((tm, f_out_p), jnp.float32)],
        ),
        compiler_params=pltpu.CompilerParams(
            dimension_semantics=("parallel", "parallel", "arbitrary")),
    )(a, h, bias2d)


def _two_stage_forward(inputs, A, weight, bias_vec_f32, cdt, out_dtype):
    B, N, F_in = inputs.shape
    F_out = weight.shape[1]
    F_in_p = _round_up(max(F_in, 1), 128)
    F_out_p = _round_up(max(F_out, 1), 128)
    if N <= 256:
        N_p = _round_up(N, 8)
        tm = tk = N_p
    else:
        N_p = _round_up(N, 256)
        tm = tk = 256

    x_p = jnp.zeros((B, N_p, F_in_p), cdt).at[:, :N, :F_in].set(inputs.astype(cdt))
    a_p = jnp.zeros((B, N_p, N_p), cdt).at[:, :N, :N].set(A.astype(cdt))
    w_p = jnp.zeros((F_in_p, F_out_p), cdt).at[:F_in, :F_out].set(weight.astype(cdt))
    b_p = jnp.zeros((1, F_out_p), jnp.float32).at[0, :F_out].set(bias_vec_f32)

    # Stage 1: H = X @ W, batch folded into the row axis.
    m_total = B * N_p
    tm_h = m_total if m_total <= 512 else 512
    m_pad = _round_up(m_total, tm_h)
    x_flat = x_p.reshape(m_total, F_in_p)
    if m_pad != m_total:
        x_flat = jnp.zeros((m_pad, F_in_p), cdt).at[:m_total].set(x_flat)
    h_flat = _xw_matmul(x_flat, w_p, cdt, tm_h)
    h = h_flat[:m_total].reshape(B, N_p, F_out_p)

    # Stage 2: out = tanh(A @ H + b), tiled contraction + accumulator.
    out_p = _ah_matmul(a_p, h, b_p, out_dtype, tm, tk)
    return out_p[:, :N, :F_out]


# ---------------------------------------------------------------------------
# Wrapper: padding, path selection, dtype handling, 2-D / 3-D branches
# ---------------------------------------------------------------------------
def graph_convolution(inputs, A, weight, bias=None, *,
                      compute_dtype=None, force_tiled=False):
    """tanh(A @ (inputs @ W) + b); inputs may be (N, F_in) or (B, N, F_in)."""
    squeeze = inputs.ndim == 2
    if squeeze:
        inputs = inputs[None]
        A = A[None]

    B, N, F_in = inputs.shape
    F_out = weight.shape[1]
    out_dtype = inputs.dtype
    cdt = jnp.dtype(compute_dtype) if compute_dtype is not None else inputs.dtype

    bias_vec = (bias.astype(jnp.float32) if bias is not None
                else jnp.zeros((F_out,), jnp.float32))

    F_in_p = _round_up(max(F_in, 1), 128)
    F_out_p = _round_up(max(F_out, 1), 128)
    N_p = _round_up(N, 8)

    bb = 0
    if not force_tiled:
        bb = _pick_fused_batch_block(
            B, N_p, F_in_p, F_out_p,
            jnp.dtype(cdt).itemsize, jnp.dtype(out_dtype).itemsize)

    if bb > 0:
        # Fully fused single-kernel path.
        B_pad = _round_up(B, bb)
        x_p = jnp.zeros((B_pad, N_p, F_in_p), cdt).at[:B, :N, :F_in].set(
            inputs.astype(cdt))
        a_p = jnp.zeros((B_pad, N_p, N_p), cdt).at[:B, :N, :N].set(A.astype(cdt))
        w_p = jnp.zeros((F_in_p, F_out_p), cdt).at[:F_in, :F_out].set(
            weight.astype(cdt))
        b_p = jnp.zeros((1, F_out_p), jnp.float32).at[0, :F_out].set(bias_vec)
        out_p = _fused_forward(x_p, a_p, w_p, b_p, out_dtype, bb)
        out = out_p[:B, :N, :F_out]
    else:
        # Large graphs / features: two-stage tiled pipeline.
        out = _two_stage_forward(inputs, A, weight, bias_vec, cdt, out_dtype)

    return out[0] if squeeze else out


def reference(inputs, A, weight, bias):
    h = jnp.matmul(inputs, weight)
    out = jnp.matmul(A, h)
    if bias is not None:
        out = out + bias
    return jnp.tanh(out)


if __name__ == "__main__":
    # Small shapes consistent with the module.
    B, N = 2, 8
    in_features, out_features = 32, 32

    key = jax.random.PRNGKey(0)
    k_x, k_a, k_w, k_b = jax.random.split(key, 4)

    # Deterministic parameter init mirroring reset_parameters():
    # uniform(-stdv, stdv) with stdv = 1/sqrt(out_features).
    stdv = 1.0 / math.sqrt(out_features)
    weight = jax.random.uniform(
        k_w, (in_features, out_features), jnp.float32, -stdv, stdv)
    bias = jax.random.uniform(
        k_b, (out_features,), jnp.float32, -stdv, stdv)

    # Batched branch (len(inputs.shape) > 2).
    x = jax.random.normal(k_x, (B, N, in_features), jnp.float32)
    A = jax.random.uniform(k_a, (B, N, N), jnp.float32)

    ref = reference(x, A, weight, bias)

    # f32 fused path — matches the PyTorch module numerics.
    out = jax.block_until_ready(graph_convolution(x, A, weight, bias))
    assert out.shape == (B, N, out_features)
    assert jnp.allclose(out, ref, atol=1e-5, rtol=1e-5)

    # bf16 MXU path (f32 accumulation, f32 epilogue) — looser tolerance.
    out_bf16 = jax.block_until_ready(
        graph_convolution(x, A, weight, bias, compute_dtype=jnp.bfloat16))
    assert out_bf16.dtype == jnp.float32
    assert jnp.allclose(out_bf16, ref, atol=3e-2, rtol=3e-2)

    # Unbatched (2-D) branch of the module (len(inputs.shape) == 2).
    out2d = jax.block_until_ready(graph_convolution(x[0], A[0], weight, bias))
    assert jnp.allclose(out2d, reference(x[0], A[0], weight, bias),
                        atol=1e-5, rtol=1e-5)

    # Tiled two-stage fallback path (used for large graphs) — also validated.
    out_tiled = jax.block_until_ready(
        graph_convolution(x, A, weight, bias, force_tiled=True))
    assert jnp.allclose(out_tiled, ref, atol=1e-5, rtol=1e-5)

    print("KERNEL_OK")
</pallas_src>

<mosaic_0001>
module attributes {stable_mosaic.version = 11 : i64} {
  func.func @_fused_kernel(%arg0: i32, %arg1: memref<16x128xf32, #tpu.memory_space<vmem>>, %arg2: memref<2x8x8xf32, #tpu.memory_space<vmem>>, %arg3: memref<128x128xf32, #tpu.memory_space<vmem>>, %arg4: memref<1x128xf32, #tpu.memory_space<vmem>>, %arg5: memref<2x8x128xf32, #tpu.memory_space<vmem>>) attributes {dimension_semantics = [#tpu.dimension_semantics<parallel>], iteration_bounds = array<i64: 1>, scalar_prefetch = 0 : i64, scratch_operands = 0 : i64, tpu.core_type = #tpu.core_type<tc>, window_params = [{transform_indices = @transform_0, window_bounds = array<i64: 16, 128>}, {transform_indices = @transform_1, window_bounds = array<i64: 2, 8, 8>}, {pipeline_mode = #tpu.pipeline_mode<synchronous>, transform_indices = @transform_2, window_bounds = array<i64: 128, 128>}, {pipeline_mode = #tpu.pipeline_mode<synchronous>, transform_indices = @transform_3, window_bounds = array<i64: 1, 128>}, {transform_indices = @transform_4, window_bounds = array<i64: 2, 8, 128>}]} {
    %c0 = arith.constant 0 : index
    %c0_0 = arith.constant 0 : index
    %0 = vector.load %arg1[%c0, %c0_0] : memref<16x128xf32, #tpu.memory_space<vmem>>, vector<16x128xf32>
    %c0_1 = arith.constant 0 : index
    %c0_2 = arith.constant 0 : index
    %1 = vector.load %arg3[%c0_1, %c0_2] : memref<128x128xf32, #tpu.memory_space<vmem>>, vector<128x128xf32>
    %cst = arith.constant dense<0.000000e+00> : vector<16x128xf32>
    %2 = tpu.matmul %0, %1, %cst {dimension_numbers = #tpu.dot_dimension_numbers<[1], [0], [0], [1], [0, 0, 1, 1], [], []>} : vector<16x128xf32>, vector<128x128xf32>, vector<16x128xf32> -> vector<16x128xf32>
    %c0_3 = arith.constant 0 : index
    %c0_4 = arith.constant 0 : index
    %3 = vector.load %arg4[%c0_3, %c0_4] : memref<1x128xf32, #tpu.memory_space<vmem>>, vector<1x128xf32>
    %4 = vector.extract_strided_slice %2 {offsets = [0, 0], sizes = [8, 128], strides = [1, 1]} : vector<16x128xf32> to vector<8x128xf32>
    %c0_5 = arith.constant 0 : index
    %c0_6 = arith.constant 0 : index
    %c0_7 = arith.constant 0 : index
    %5 = vector.load %arg2[%c0_5, %c0_6, %c0_7] : memref<2x8x8xf32, #tpu.memory_space<vmem>>, vector<1x8x8xf32>
    %6 = vector.shape_cast %5 : vector<1x8x8xf32> to vector<8x8xf32>
    %cst_8 = arith.constant dense<0.000000e+00> : vector<8x128xf32>
    %7 = tpu.matmul %6, %4, %cst_8 {dimension_numbers = #tpu.dot_dimension_numbers<[1], [0], [0], [1], [0, 0, 1, 1], [], []>} : vector<8x8xf32>, vector<8x128xf32>, vector<8x128xf32> -> vector<8x128xf32>
    %8 = vector.broadcast %3 : vector<1x128xf32> to vector<8x128xf32>
    %9 = arith.addf %7, %8 : vector<8x128xf32>
    %10 = math.tanh %9 : vector<8x128xf32>
    %c0_9 = arith.constant 0 : index
    %c0_10 = arith.constant 0 : index
    %c0_11 = arith.constant 0 : index
    %11 = vector.load %arg5[%c0_9, %c0_10, %c0_11] : memref<2x8x128xf32, #tpu.memory_space<vmem>>, vector<1x8x128xf32>
    %12 = vector.shape_cast %11 : vector<1x8x128xf32> to vector<8x128xf32>
    %13 = vector.shape_cast %10 : vector<8x128xf32> to vector<1x8x128xf32>
    tpu.vector_store %arg5[%c0_9, %c0_10, %c0_11], %13 {strides = array<i32>} : memref<2x8x128xf32, #tpu.memory_space<vmem>>, vector<1x8x128xf32>,
    %14 = vector.extract_strided_slice %2 {offsets = [8, 0], sizes = [8, 128], strides = [1, 1]} : vector<16x128xf32> to vector<8x128xf32>
    %c1 = arith.constant 1 : index
    %c0_12 = arith.constant 0 : index
    %c0_13 = arith.constant 0 : index
    %15 = vector.load %arg2[%c1, %c0_12, %c0_13] : memref<2x8x8xf32, #tpu.memory_space<vmem>>, vector<1x8x8xf32>
    %16 = vector.shape_cast %15 : vector<1x8x8xf32> to vector<8x8xf32>
    %cst_14 = arith.constant dense<0.000000e+00> : vector<8x128xf32>
    %17 = tpu.matmul %16, %14, %cst_14 {dimension_numbers = #tpu.dot_dimension_numbers<[1], [0], [0], [1], [0, 0, 1, 1], [], []>} : vector<8x8xf32>, vector<8x128xf32>, vector<8x128xf32> -> vector<8x128xf32>
    %18 = vector.broadcast %3 : vector<1x128xf32> to vector<8x128xf32>
    %19 = arith.addf %17, %18 : vector<8x128xf32>
    %20 = math.tanh %19 : vector<8x128xf32>
    %c1_15 = arith.constant 1 : index
    %c0_16 = arith.constant 0 : index
    %c0_17 = arith.constant 0 : index
    %21 = vector.load %arg5[%c1_15, %c0_16, %c0_17] : memref<2x8x128xf32, #tpu.memory_space<vmem>>, vector<1x8x128xf32>
    %22 = vector.shape_cast %21 : vector<1x8x128xf32> to vector<8x128xf32>
    %23 = vector.shape_cast %20 : vector<8x128xf32> to vector<1x8x128xf32>
    tpu.vector_store %arg5[%c1_15, %c0_16, %c0_17], %23 {strides = array<i32>} : memref<2x8x128xf32, #tpu.memory_space<vmem>>, vector<1x8x128xf32>,
    return
  }
  func.func @transform_0(%arg0: i32) -> (i32, i32) {
    %c0_i32 = arith.constant 0 : i32
    %c0_i32_0 = arith.constant 0 : i32
    return %arg0, %c0_i32 : i32, i32
  }
  func.func @transform_1(%arg0: i32) -> (i32, i32, i32) {
    %c0_i32 = arith.constant 0 : i32
    %c0_i32_0 = arith.constant 0 : i32
    %c0_i32_1 = arith.constant 0 : i32
    return %arg0, %c0_i32, %c0_i32_0 : i32, i32, i32
  }
  func.func @transform_2(%arg0: i32) -> (i32, i32) {
    %c0_i32 = arith.constant 0 : i32
    %c0_i32_0 = arith.constant 0 : i32
    %c0_i32_1 = arith.constant 0 : i32
    return %c0_i32, %c0_i32_0 : i32, i32
  }
  func.func @transform_3(%arg0: i32) -> (i32, i32) {
    %c0_i32 = arith.constant 0 : i32
    %c0_i32_0 = arith.constant 0 : i32
    %c0_i32_1 = arith.constant 0 : i32
    return %c0_i32, %c0_i32_0 : i32, i32
  }
  func.func @transform_4(%arg0: i32) -> (i32, i32, i32) {
    %c0_i32 = arith.constant 0 : i32
    %c0_i32_0 = arith.constant 0 : i32
    %c0_i32_1 = arith.constant 0 : i32
    return %arg0, %c0_i32, %c0_i32_0 : i32, i32, i32
  }
}

</mosaic_0001>

<bundles_post_ra>
// kernel: tpu_custom_call.1
= control target key start
LH: loop header
LB: loop body
LE: loop exit
PB: predicated region body
PF: predicated region fallthrough
CT: control target
= control target key end

     0   :  { %9 = vsyncpa [#allocation3], 0  ;;  %s560_s0 = inlined_call_operand.hbm [shape: f32[16,128], index: 0, kind: input, shape index: {}]   ;;  %s561_s1 = inlined_call_operand.hbm [shape: f32[2,8,8], index: 1, kind: input, shape index: {}]   ;;  %s562_s2 = inlined_call_operand.hbm [shape: f32[128,128], index: 2, kind: input, shape index: {}]   ;;  %s563_s3 = inlined_call_operand.vmem [shape: f32[1,128], index: 3, kind: input, shape index: {}]   ;;  %s564_s4 = inlined_call_operand.hbm [shape: f32[2,8,128], index: 4, kind: output, shape index: {}]  }
   0x1   :  { %10 = vsyncpa [#allocation6], 0 }
   0x2   :  { %11 = vsyncpa [#allocation4], 0  ;;  %s500_s15 = smov [#allocation5]   ;;  %s501_s17 = smov [#allocation2]  }
   0x3   :  { %s29_s16 = sshll.u32 %s500_s15, 4  ;;  %s17_s18 = sshll.u32 %s501_s17, 4  ;;  %s30_s16 = int_to_ptr.vmem [resolvable:$true] %s29_s16  ;;  %s18_s18 = int_to_ptr.vmem [resolvable:$true] %s17_s18 }
   0x4   :  { %s422_s19 = scalar_lea.vmem %s30_s16, 256  ;;  %p427_p1 = scmp.lt.s32.totalorder %s30_s16, %s30_s16 }
   0x5   :  { %p423_p0 = scmp.ne.s32.totalorder %s30_s16, %s422_s19  ;;  %p428_p2 = scmp.lt.s32.totalorder %s422_s19, %s422_s19 }
   0x7   :  { %p429_p3 = por %p428_p2, %p427_p1 }
   0x9   :  { %p430_p4 = pnand %p429_p3, %p423_p0 }
   0xb   :  { %433 = shalt.err (!%p430_p4)
}
   0xc   :  { %s502_s20 = smov 128   ;;  %s503_s21 = smov 8  }
   0xd   :  { %35 = dma.hbm_to_vmem [thread:$0]  %s561_s1, 256, %s30_s16, [#allocation6], %s502_s20, %s502_s20, %s503_s21  }
   0xe   :  { %s442_s24 = scalar_lea.vmem %s18_s18, 256  ;;  %p447_p6 = scmp.lt.s32.totalorder %s18_s18, %s18_s18 }
   0xf   :  { %p443_p5 = scmp.ne.s32.totalorder %s18_s18, %s442_s24  ;;  %p448_p7 = scmp.lt.s32.totalorder %s442_s24, %s442_s24 }
  0x11   :  { %p449_p8 = por %p448_p7, %p447_p6 }
  0x13   :  { %p450_p9 = pnand %p449_p8, %p443_p5 }
  0x15   :  { %453 = shalt.err (!%p450_p9)
}
  0x16   :  { %23 = dma.hbm_to_vmem [thread:$0]  %s560_s0, 256, %s18_s18, [#allocation3], %s502_s20, %s502_s20, %s503_s21  }
  0x17   :  { %s504_s27 = smov [#allocation7]  }
  0x18   :  { %s41_s28 = sshll.u32 %s504_s27, 4  ;;  %s42_s28 = int_to_ptr.vmem [resolvable:$true] %s41_s28 }
  0x19   :  { %s462_s29 = scalar_lea.vmem %s42_s28, 2048  ;;  %p467_p11 = scmp.lt.s32.totalorder %s42_s28, %s42_s28 }
  0x1a   :  { %p463_p10 = scmp.ne.s32.totalorder %s42_s28, %s462_s29  ;;  %p468_p12 = scmp.lt.s32.totalorder %s462_s29, %s462_s29 }
  0x1c   :  { %p469_p13 = por %p468_p12, %p467_p11 }
  0x1e   :  { %p470_p0 = pnand %p469_p13, %p463_p10 }
  0x20   :  { %473 = shalt.err (!%p470_p0)
}
  0x21   :  { %47 = dma.hbm_to_vmem [thread:$0]  %s562_s2, 2048, %s42_s28, [#allocation6], %s502_s20, %s502_s20, %s503_s21  }
  0x22   :  { %494 = dma.done.wait [#allocation3], 256  }
  0x23   :  { %495 = vsyncadd [#allocation3], 4294967040 }
  0x24   :  { %496 = dma.done.wait [#allocation6], 2304  }
  0x25   :  { %497 = vsyncadd [#allocation6], 4294964992  ;;  %v76_v0 = vld [vmem:[#allocation7 + $0x78] sm:$0xff]  ;;  %v75_v1 = vld [vmem:[#allocation7 + $0x70] sm:$0xff]  ;;  %v505_v18 = vmov 0.0   ;;  %vm506_vm0 = vmmov 0  }
  0x26   :  { %357 = vmatprep.subr.mxu0 %v76_v0  ;;  %v74_v2 = vld [vmem:[#allocation7 + $0x68] sm:$0xff]  ;;  %v73_v3 = vld [vmem:[#allocation7 + $0x60] sm:$0xff]  ;;  %v72_v5 = vld [vmem:[#allocation7 + $0x58] sm:$0xff]  ;;  %392 = vmatprep.subr.mxu1 %v505_v18  ;;  %vm160_vm1 = vcmask 64512   ;;  %s507_s5 = smov [#allocation8]  }
  0x27   :  { %358 = vmatpush3.msra.mxu0 %v76_v0  ;;  %v59_v4 = vld [vmem:[#allocation2] sm:$0xff]  ;;  %v71_v6 = vld [vmem:[#allocation7 + $0x50] sm:$0xff]  ;;  %v70_v7 = vld [vmem:[#allocation7 + $0x48] sm:$0xff]  ;;  %394 = vmatprep.mubr.msk.f32.mxu1 %vm506_vm0, %v505_v18  ;;  %s319_s6 = sshll.u32 %s507_s5, 4  ;;  %s320_s6 = int_to_ptr.vmem [resolvable:$true] %s319_s6 }
  0x28   :  { %359 = vmatprep.subr.mxu0 %v75_v1  ;;  %389 = vmatprep.mubr.f32.mxu0 %v59_v4  ;;  %v69_v8 = vld [vmem:[#allocation7 + $0x40] sm:$0xff]  ;;  %v68_v9 = vld [vmem:[#allocation7 + $0x38] sm:$0xff]  ;;  %v67_v10 = vld [vmem:[#allocation7 + $0x30] sm:$0xff]  ;;  %s474_s7 = scalar_lea.vmem %s320_s6, 256  ;;  %p479_p2 = scmp.lt.s32.totalorder %s320_s6, %s320_s6 }
  0x29   :  { %360 = vmatpush3.msra.mxu0 %v75_v1  ;;  %v66_v11 = vld [vmem:[#allocation7 + $0x28] sm:$0xff]  ;;  %v65_v12 = vld [vmem:[#allocation7 + $0x20] sm:$0xff]  ;;  %v64_v13 = vld [vmem:[#allocation7 + $0x18] sm:$0xff]  ;;  %p475_p1 = scmp.ne.s32.totalorder %s320_s6, %s474_s7  ;;  %p480_p3 = scmp.lt.s32.totalorder %s474_s7, %s474_s7 }
  0x2a   :  { %361 = vmatprep.subr.mxu0 %v74_v2  ;;  %v63_v14 = vld [vmem:[#allocation7 + $0x10] sm:$0xff]  ;;  %v62_v15 = vld [vmem:[#allocation7 + $0x8] sm:$0xff]  ;;  %v61_v16 = vld [vmem:[#allocation7] sm:$0xff] }
  0x2b   :  { %362 = vmatpush3.msra.mxu0 %v74_v2  ;;  %v60_v17 = vld [vmem:[#allocation2 + $0x8] sm:$0xff]  ;;  %v153_v20 = vld [vmem:[#allocation5] sm:$0xff]  ;;  %v237_v22 = vld [vmem:[#allocation5 + $0x8] sm:$0xff]  ;;  %p481_p4 = por %p480_p3, %p479_p2 }
  0x2c   :  { %363 = vmatprep.subr.mxu0 %v73_v3  ;;  %v332_v23 = vld [vmem:[%s563_s3] ss:$0 sm:$0xff] }
  0x2d   :  { %364 = vmatpush3.msra.mxu0 %v73_v3  ;;  %p482_p5 = pnand %p481_p4, %p475_p1 }
  0x2e   :  { %365 = vmatprep.subr.mxu0 %v72_v5 }
  0x2f   :  { %366 = vmatpush3.msra.mxu0 %v72_v5 }
  0x30   :  { %367 = vmatprep.subr.mxu0 %v71_v6 }
  0x31   :  { %368 = vmatpush3.msra.mxu0 %v71_v6 }
  0x32   :  { %369 = vmatprep.subr.mxu0 %v70_v7 }
  0x33   :  { %370 = vmatpush3.msra.mxu0 %v70_v7 }
  0x34   :  { %371 = vmatprep.subr.mxu0 %v69_v8 }
  0x35   :  { %372 = vmatpush3.msra.mxu0 %v69_v8 }
  0x36   :  { %373 = vmatprep.subr.mxu0 %v68_v9 }
  0x37   :  { %374 = vmatpush3.msra.mxu0 %v68_v9 }
  0x38   :  { %375 = vmatprep.subr.mxu0 %v67_v10 }
  0x39   :  { %376 = vmatpush3.msra.mxu0 %v67_v10 }
  0x3a   :  { %377 = vmatprep.subr.mxu0 %v66_v11 }
  0x3b   :  { %378 = vmatpush3.msra.mxu0 %v66_v11 }
  0x3c   :  { %379 = vmatprep.subr.mxu0 %v65_v12 }
  0x3d   :  { %380 = vmatpush3.msra.mxu0 %v65_v12 }
  0x3e   :  { %381 = vmatprep.subr.mxu0 %v64_v13 }
  0x3f   :  { %382 = vmatpush3.msra.mxu0 %v64_v13 }
  0x40   :  { %383 = vmatprep.subr.mxu0 %v63_v14 }
  0x41   :  { %384 = vmatpush3.msra.mxu0 %v63_v14 }
  0x42   :  { %385 = vmatprep.subr.mxu0 %v62_v15 }
  0x43   :  { %386 = vmatpush3.msra.mxu0 %v62_v15 }
  0x44   :  { %387 = vmatprep.subr.mxu0 %v61_v16 }
  0x45   :  { %388 = vmatpush3.msra.mxu0 %v61_v16 }
  0x46   :  { %390 = vmatmul.mubr.f32.vlgmr.msra.gmra.mxu0 %v60_v17 }
 0x106   :  { %v391_v19 = vpop.f32.mrf.mxu0 }
 0x108   :  { %v143_v21 = vpop.f32.mrf.mxu0 }
 0x109   :  { %393 = vmatpush3.msra.mxu1 %v143_v21 }
 0x10a   :  { %395 = vmatmul.mubr.msk.f32.vlgmr.msra.gmra.mxu1 %vm160_vm1, %v153_v20  ;;  %397 = vmatprep.subr.mxu1 %v505_v18 }
 0x10b   :  { %398 = vmatpush3.msra.mxu1 %v391_v19  ;;  %399 = vmatprep.mubr.msk.f32.mxu1 %vm506_vm0, %v505_v18 }
 0x10e   :  { %400 = vmatmul.mubr.msk.f32.vlgmr.msra.gmra.mxu1 %vm160_vm1, %v237_v22 }
 0x1ca   :  { %v230_v24 = vpop.f32.mrf.mxu1 }
 0x1cb   :  { %v231_v25 = vadd.f32 %v332_v23, %v230_v24 }
 0x1cc   :  { %v396_v26 = vpop.f32.mrf.mxu1 }
 0x1cd   :  { %410 = vtanh.f32 %v231_v25 }
 0x1ce   :  { %v307_v27 = vpop.f32.mrf.mxu1 }
 0x1cf   :  { %v308_v28 = vadd.f32 %v332_v23, %v307_v27 }
 0x1d0   :  { %v401_v29 = vpop.f32.mrf.mxu1 }
 0x1d1   :  { %412 = vtanh.f32 %v308_v28 }
 0x1da   :  { %v411_v30 = vpop.eup %410 }
 0x1db   :  { %235 = vst [vmem:[#allocation8] sm:$0xff] %v411_v30 }
 0x1de   :  { %v413_v31 = vpop.eup %412 }
 0x1df   :  { %313 = vst [vmem:[#allocation8 + $0x8] sm:$0xff] %v413_v31 }
 0x1e0   :  { %485 = shalt.err (!%p482_p5)
}
 0x1e1   :  { %325 = dma.vmem_to_hbm [thread:$0]  %s320_s6, 256, %s564_s4, [#allocation4], %s502_s20, %s502_s20, %s503_s21  }
 0x1e2   :  { %498 = dma.done.wait [#allocation4], 256  }
 0x1e3   :  { %499 = vsyncadd [#allocation4], 4294967040 }
 0x1e4   :  { %329 = vsyncpa [#allocation3], 1 }
 0x1e5   :  { %330 = vsyncpa [#allocation6], 1 }
 0x1e6   :  { %331 = vsyncpa [#allocation4], 1 }

</bundles_post_ra>
